<compile_context>
chip_gen: v6e
topology: v6e:2x2x1
jax: 0.10.0
libtpu: 0.0.40
codegen_flags: <defaults>
</compile_context>

<pallas_src>
import functools
import math

import jax
import jax.numpy as jnp
from jax import lax
from jax.experimental import pallas as pl
from jax.experimental.pallas import tpu as pltpu

EPS = 1e-5  # nn.LayerNorm default eps


def _erf(x):
    # Abramowitz & Stegun 7.1.26 rational approximation, |abs err| < ~1.5e-7 (f32).
    a1, a2, a3, a4, a5 = 0.254829592, -0.284496736, 1.421413741, -1.453152027, 1.061405429
    p = 0.3275911
    s = jnp.where(x >= 0.0, 1.0, -1.0)
    ax = jnp.abs(x)
    t = pl.reciprocal(1.0 + p * ax, approx=True)
    poly = ((((a5 * t + a4) * t + a3) * t + a2) * t + a1) * t
    return s * (1.0 - poly * jnp.exp(-ax * ax))


def _gelu_exact(x):
    return 0.5 * x * (1.0 + _erf(x * (1.0 / math.sqrt(2.0))))


def _layernorm(x, gamma, beta):
    mu = jnp.mean(x, axis=-1, keepdims=True)
    var = jnp.mean((x - mu) ** 2, axis=-1, keepdims=True)
    return (x - mu) * lax.rsqrt(var + EPS) * gamma + beta


def transformer_block_kernel(n_heads, D, S, bt, hid_chunk,
                             x_ref, g1_ref, b1_ref,
                             wqkv_ref, wp_ref, bp_ref,
                             g2_ref, b2_ref,
                             w1_ref, bm1_ref, w2_ref, bm2_ref,
                             o_ref, qkv_sc, attn_sc):
    f32 = jnp.float32
    bf16 = jnp.bfloat16

    x = x_ref[...]                                   # (rows, E) f32, rows = bt*S
    E = x.shape[-1]

    # ---- LN1 + fused QKV projection: one (rows,E)x(E,3E) MXU pass; result stored once as bf16 ----
    h = _layernorm(x, g1_ref[...], b1_ref[...]).astype(bf16)
    qkv_sc[...] = jnp.dot(h, wqkv_ref[...], preferred_element_type=f32).astype(bf16)

    # Causal mask built once, shared by every (batch, head) pair.
    row = lax.broadcasted_iota(jnp.int32, (S, S), 0)
    col = lax.broadcasted_iota(jnp.int32, (S, S), 1)
    causal = col <= row

    # ---- causal attention per batch element: heads write lane-dense into attn_sc ----
    def attend(b, carry):
        r0 = pl.multiple_of(b * S, S)                # sublane-aligned dynamic row offset
        for hh in range(n_heads):                    # small static head loop (lane offsets)
            c0 = hh * D
            q = qkv_sc[pl.ds(r0, S), pl.ds(c0, D)]               # bf16 (S, D)
            k = qkv_sc[pl.ds(r0, S), pl.ds(E + c0, D)]
            v = qkv_sc[pl.ds(r0, S), pl.ds(2 * E + c0, D)]
            # q @ k^T via dot_general contracting last dims (no transpose materialized);
            # the 1/sqrt(dk) scale was folded into the Q weight columns in the wrapper.
            s = lax.dot_general(q, k, (((1,), (1,)), ((), ())),
                                preferred_element_type=f32)
            s = jnp.where(causal, s, -1e30)          # masked_fill(-inf) equivalent
            m = jnp.max(s, axis=-1, keepdims=True)
            p = jnp.exp(s - m)                       # f32 softmax, EUP exp
            p = p * pl.reciprocal(jnp.sum(p, axis=-1, keepdims=True), approx=True)
            o_h = jnp.dot(p.astype(bf16), v, preferred_element_type=f32)   # (S, D)
            attn_sc[pl.ds(r0, S), pl.ds(c0, D)] = o_h.astype(bf16)
        return carry

    lax.fori_loop(0, bt, attend, 0, unroll=True)

    # ---- single output projection over all rows/heads + residual ----
    proj = jnp.dot(attn_sc[...], wp_ref[...], preferred_element_type=f32)  # (rows, E)
    x1 = x + proj + bp_ref[...]

    # ---- LN2 + MLP chunked over the 4E hidden dim: Linear -> GELU(exact) -> Linear ----
    h2 = _layernorm(x1, g2_ref[...], b2_ref[...]).astype(bf16)
    H4 = w1_ref.shape[-1]
    mlp = jnp.zeros_like(x1)
    for c0 in range(0, H4, hid_chunk):               # static chunk loop (1 chunk at toy size)
        z = jnp.dot(h2, w1_ref[:, c0:c0 + hid_chunk], preferred_element_type=f32)
        z = z + bm1_ref[:, c0:c0 + hid_chunk]
        z = _gelu_exact(z)                           # f32 (v5e VPU/EUP have no bf16 path)
        mlp = mlp + jnp.dot(z.astype(bf16), w2_ref[c0:c0 + hid_chunk, :],
                            preferred_element_type=f32)

    o_ref[...] = x1 + mlp + bm2_ref[...]


def transformer_block(x, params, n_heads, dk, block_batch=None):
    B, S, E = x.shape
    D = E // n_heads
    H4 = 4 * E
    (g1, b1, wq, wk, wv, wp, bp, g2, b2, w1, bm1, w2, bm2) = params

    # Weight prep (plain JAX, outside the kernel):
    #  * fuse QKV into one (E, 3E) weight, folding the 1/sqrt(dk) score scale into Wq,
    #  * down-cast matmul weights to bf16 (halves weight DMA bytes; f32 MXU accumulation).
    scale = 1.0 / math.sqrt(dk)
    wqkv = jnp.concatenate([wq * scale, wk, wv], axis=1).astype(jnp.bfloat16)   # (E, 3E)
    wp_b = wp.astype(jnp.bfloat16)                                              # (E, E)
    w1b = w1.astype(jnp.bfloat16)                                               # (E, 4E)
    w2b = w2.astype(jnp.bfloat16)                                               # (4E, E)

    # Flatten batch into the matmul row dimension; target ~256 rows per grid step but keep
    # >= 2 grid steps when the batch allows so the "parallel" axis can shard across v7x's 2 TCs.
    if block_batch is None:
        block_batch = max(1, min(B, 256 // S))
        while block_batch > 1 and B // block_batch < 2:
            block_batch -= 1
    while B % block_batch:
        block_batch -= 1
    bt = block_batch
    rows = bt * S
    x2 = x.reshape(B * S, E)

    # Chunk the MLP hidden dim (bounds the live z slab; single chunk at small E).
    hid_chunk = 512 if H4 % 512 == 0 else H4

    kernel = functools.partial(transformer_block_kernel, n_heads, D, S, bt, hid_chunk)

    def full(shape):
        zeros = (0,) * len(shape)
        return pl.BlockSpec(shape, lambda i, z=zeros: z)

    in_specs = [
        pl.BlockSpec((rows, E), lambda i: (i, 0)),     # x (flattened rows)
        full((1, E)), full((1, E)),                    # ln1 gamma, beta
        full((E, 3 * E)),                              # fused Wqkv (bf16, scale folded into Q)
        full((E, E)), full((1, E)),                    # Wproj (bf16), bproj
        full((1, E)), full((1, E)),                    # ln2 gamma, beta
        full((E, H4)), full((1, H4)),                  # mlp W1 (bf16), b1
        full((H4, E)), full((1, E)),                   # mlp W2 (bf16), b2
    ]
    out = pl.pallas_call(
        kernel,
        out_shape=jax.ShapeDtypeStruct((B * S, E), jnp.float32),
        grid=(B // bt,),
        in_specs=in_specs,
        out_specs=pl.BlockSpec((rows, E), lambda i: (i, 0)),
        scratch_shapes=[
            pltpu.VMEM((rows, 3 * E), jnp.bfloat16),   # fused QKV (bf16, written once)
            pltpu.VMEM((rows, E), jnp.bfloat16),       # head-output slab (pre-projection)
        ],
        compiler_params=pltpu.CompilerParams(
            dimension_semantics=("parallel",),
            vmem_limit_bytes=32 * 1024 * 1024,
        ),
    )(x2, g1, b1, wqkv, wp_b, bp, g2, b2, w1b, bm1, w2b, bm2)
    return out.reshape(B, S, E)


def reference(x, params, n_heads, dk):
    (g1, b1, wq, wk, wv, wp, bp, g2, b2, w1, bm1, w2, bm2) = params
    B, S, E = x.shape
    D = E // n_heads

    def ln(t, g, b):
        mu = t.mean(-1, keepdims=True)
        var = ((t - mu) ** 2).mean(-1, keepdims=True)
        return (t - mu) / jnp.sqrt(var + EPS) * g + b

    h = ln(x, g1, b1)
    q = (h @ wq).reshape(B, S, n_heads, D).transpose(0, 2, 1, 3)
    k = (h @ wk).reshape(B, S, n_heads, D).transpose(0, 2, 1, 3)
    v = (h @ wv).reshape(B, S, n_heads, D).transpose(0, 2, 1, 3)
    attn = jnp.einsum("nhqd,nhkd->nhqk", q, k) / math.sqrt(dk)
    mask = jnp.tril(jnp.ones((S, S)))
    attn = jnp.where(mask == 0, -jnp.inf, attn)
    attn = jax.nn.softmax(attn, axis=-1)
    y = jnp.einsum("nhqk,nhkd->nhqd", attn, v).transpose(0, 2, 1, 3).reshape(B, S, E)
    y = y @ wp + bp
    x = x + y
    h2 = ln(x, g2, b2)
    z = jax.nn.gelu(h2 @ w1 + bm1, approximate=False)
    return x + (z @ w2 + bm2)


if __name__ == "__main__":
    B, S, E, H = 2, 8, 32, 4       # batch, seq, embed_dim, n_heads
    dk = E // H                    # config.dk

    key = jax.random.PRNGKey(0)
    keys = jax.random.split(key, 16)
    x = jax.random.normal(keys[0], (B, S, E), jnp.float32)

    def init(k, shape, scale=0.1):
        return scale * jax.random.normal(k, shape, jnp.float32)

    params = (
        1.0 + 0.1 * jax.random.normal(keys[1], (1, E), jnp.float32),   # ln1 gamma
        0.1 * jax.random.normal(keys[2], (1, E), jnp.float32),         # ln1 beta
        init(keys[3], (E, E)),                                         # Wq (in,out)
        init(keys[4], (E, E)),                                         # Wk
        init(keys[5], (E, E)),                                         # Wv
        init(keys[6], (E, E)),                                         # Wproj
        init(keys[7], (1, E)),                                         # bproj
        1.0 + 0.1 * jax.random.normal(keys[8], (1, E), jnp.float32),   # ln2 gamma
        0.1 * jax.random.normal(keys[9], (1, E), jnp.float32),         # ln2 beta
        init(keys[10], (E, 4 * E)),                                    # mlp W1
        init(keys[11], (1, 4 * E)),                                    # mlp b1
        init(keys[12], (4 * E, E)),                                    # mlp W2
        init(keys[13], (1, E)),                                        # mlp b2
    )

    out = transformer_block(x, params, H, dk)
    out = jax.block_until_ready(out)

    ref = reference(x, params, H, dk)
    max_err = float(jnp.max(jnp.abs(out - ref)))
    # bf16 MXU inputs (f32 accumulation) -> compare to the f32 reference with a loosened
    # tolerance; observed error is well below this bound at these shapes.
    assert jnp.allclose(out, ref, atol=5e-2, rtol=5e-2), f"max abs err {max_err}"
    print("KERNEL_OK")
</pallas_src>

<mosaic_0001>
module attributes {stable_mosaic.version = 11 : i64} {
  func.func @transformer_block_kernel(%arg0: i32, %arg1: memref<8x32xf32, #tpu.memory_space<vmem>>, %arg2: memref<1x32xf32, #tpu.memory_space<vmem>>, %arg3: memref<1x32xf32, #tpu.memory_space<vmem>>, %arg4: memref<32x96xbf16, #tpu.memory_space<vmem>>, %arg5: memref<32x32xbf16, #tpu.memory_space<vmem>>, %arg6: memref<1x32xf32, #tpu.memory_space<vmem>>, %arg7: memref<1x32xf32, #tpu.memory_space<vmem>>, %arg8: memref<1x32xf32, #tpu.memory_space<vmem>>, %arg9: memref<32x128xbf16, #tpu.memory_space<vmem>>, %arg10: memref<1x128xf32, #tpu.memory_space<vmem>>, %arg11: memref<128x32xbf16, #tpu.memory_space<vmem>>, %arg12: memref<1x32xf32, #tpu.memory_space<vmem>>, %arg13: memref<8x32xf32, #tpu.memory_space<vmem>>, %arg14: memref<8x96xbf16, #tpu.memory_space<vmem>>, %arg15: memref<8x32xbf16, #tpu.memory_space<vmem>>) attributes {dimension_semantics = [#tpu.dimension_semantics<parallel>], iteration_bounds = array<i64: 2>, scalar_prefetch = 0 : i64, scratch_operands = 2 : i64, tpu.core_type = #tpu.core_type<tc>, window_params = [{transform_indices = @transform_0, window_bounds = array<i64: 8, 32>}, {pipeline_mode = #tpu.pipeline_mode<synchronous>, transform_indices = @transform_1, window_bounds = array<i64: 1, 32>}, {pipeline_mode = #tpu.pipeline_mode<synchronous>, transform_indices = @transform_2, window_bounds = array<i64: 1, 32>}, {pipeline_mode = #tpu.pipeline_mode<synchronous>, transform_indices = @transform_3, window_bounds = array<i64: 32, 96>}, {pipeline_mode = #tpu.pipeline_mode<synchronous>, transform_indices = @transform_4, window_bounds = array<i64: 32, 32>}, {pipeline_mode = #tpu.pipeline_mode<synchronous>, transform_indices = @transform_5, window_bounds = array<i64: 1, 32>}, {pipeline_mode = #tpu.pipeline_mode<synchronous>, transform_indices = @transform_6, window_bounds = array<i64: 1, 32>}, {pipeline_mode = #tpu.pipeline_mode<synchronous>, transform_indices = @transform_7, window_bounds = array<i64: 1, 32>}, {pipeline_mode = #tpu.pipeline_mode<synchronous>, transform_indices = @transform_8, window_bounds = array<i64: 32, 128>}, {pipeline_mode = #tpu.pipeline_mode<synchronous>, transform_indices = @transform_9, window_bounds = array<i64: 1, 128>}, {pipeline_mode = #tpu.pipeline_mode<synchronous>, transform_indices = @transform_10, window_bounds = array<i64: 128, 32>}, {pipeline_mode = #tpu.pipeline_mode<synchronous>, transform_indices = @transform_11, window_bounds = array<i64: 1, 32>}, {transform_indices = @transform_12, window_bounds = array<i64: 8, 32>}]} {
    %c0 = arith.constant 0 : index
    %c0_0 = arith.constant 0 : index
    %0 = vector.load %arg1[%c0, %c0_0] : memref<8x32xf32, #tpu.memory_space<vmem>>, vector<8x32xf32>
    %c0_1 = arith.constant 0 : index
    %c0_2 = arith.constant 0 : index
    %1 = vector.load %arg2[%c0_1, %c0_2] : memref<1x32xf32, #tpu.memory_space<vmem>>, vector<1x32xf32>
    %c0_3 = arith.constant 0 : index
    %c0_4 = arith.constant 0 : index
    %2 = vector.load %arg3[%c0_3, %c0_4] : memref<1x32xf32, #tpu.memory_space<vmem>>, vector<1x32xf32>
    %cst = arith.constant dense<0.000000e+00> : vector<8xf32>
    %3 = vector.multi_reduction <add>, %0, %cst [1] : vector<8x32xf32> to vector<8xf32>
    %4 = vector.shape_cast %3 : vector<8xf32> to vector<8x1xf32>
    %cst_5 = arith.constant 3.200000e+01 : f32
    %5 = vector.broadcast %cst_5 : f32 to vector<8x1xf32>
    %6 = arith.divf %4, %5 : vector<8x1xf32>
    %7 = vector.broadcast %6 : vector<8x1xf32> to vector<8x32xf32>
    %8 = arith.subf %0, %7 : vector<8x32xf32>
    %9 = arith.mulf %8, %8 : vector<8x32xf32>
    %cst_6 = arith.constant dense<0.000000e+00> : vector<8xf32>
    %10 = vector.multi_reduction <add>, %9, %cst_6 [1] : vector<8x32xf32> to vector<8xf32>
    %11 = vector.shape_cast %10 : vector<8xf32> to vector<8x1xf32>
    %cst_7 = arith.constant 3.200000e+01 : f32
    %12 = vector.broadcast %cst_7 : f32 to vector<8x1xf32>
    %13 = arith.divf %11, %12 : vector<8x1xf32>
    %14 = vector.broadcast %6 : vector<8x1xf32> to vector<8x32xf32>
    %15 = arith.subf %0, %14 : vector<8x32xf32>
    %cst_8 = arith.constant 9.99999974E-6 : f32
    %16 = vector.broadcast %cst_8 : f32 to vector<8x1xf32>
    %17 = arith.addf %13, %16 : vector<8x1xf32>
    %18 = math.rsqrt %17 : vector<8x1xf32>
    %19 = vector.broadcast %18 : vector<8x1xf32> to vector<8x32xf32>
    %20 = arith.mulf %15, %19 : vector<8x32xf32>
    %21 = vector.broadcast %1 : vector<1x32xf32> to vector<8x32xf32>
    %22 = arith.mulf %20, %21 : vector<8x32xf32>
    %23 = vector.broadcast %2 : vector<1x32xf32> to vector<8x32xf32>
    %24 = arith.addf %22, %23 : vector<8x32xf32>
    %25 = arith.truncf %24 : vector<8x32xf32> to vector<8x32xbf16>
    %c0_9 = arith.constant 0 : index
    %c0_10 = arith.constant 0 : index
    %26 = vector.load %arg4[%c0_9, %c0_10] : memref<32x96xbf16, #tpu.memory_space<vmem>>, vector<32x96xbf16>
    %cst_11 = arith.constant dense<0.000000e+00> : vector<8x96xf32>
    %27 = tpu.matmul %25, %26, %cst_11 {dimension_numbers = #tpu.dot_dimension_numbers<[1], [0], [0], [1], [0, 0, 1, 1], [], []>} : vector<8x32xbf16>, vector<32x96xbf16>, vector<8x96xf32> -> vector<8x96xf32>
    %28 = arith.truncf %27 : vector<8x96xf32> to vector<8x96xbf16>
    %c0_12 = arith.constant 0 : index
    %c0_13 = arith.constant 0 : index
    %29 = vector.load %arg14[%c0_12, %c0_13] : memref<8x96xbf16, #tpu.memory_space<vmem>>, vector<8x96xbf16>
    tpu.vector_store %arg14[%c0_12, %c0_13], %28 {strides = array<i32>} : memref<8x96xbf16, #tpu.memory_space<vmem>>, vector<8x96xbf16>,
    %30 = tpu.iota {dimensions = array<i32: 0>} : vector<8x8xi32>
    %31 = tpu.iota {dimensions = array<i32: 1>} : vector<8x8xi32>
    %32 = arith.cmpi sle, %31, %30 : vector<8x8xi32>
    %c0_i32 = arith.constant 0 : i32
    %c8_i32 = arith.constant 8 : i32
    %33 = arith.muli %c0_i32, %c8_i32 : i32
    %34 = tpu.assume_multiple %33, 8 : i32
    %35 = arith.index_cast %34 : i32 to index
    %c0_14 = arith.constant 0 : index
    %36 = vector.load %arg14[%35, %c0_14] : memref<8x96xbf16, #tpu.memory_space<vmem>>, vector<8x8xbf16>
    %37 = arith.index_cast %34 : i32 to index
    %c32 = arith.constant 32 : index
    %38 = vector.load %arg14[%37, %c32] : memref<8x96xbf16, #tpu.memory_space<vmem>>, vector<8x8xbf16>
    %39 = arith.index_cast %34 : i32 to index
    %c64 = arith.constant 64 : index
    %40 = vector.load %arg14[%39, %c64] : memref<8x96xbf16, #tpu.memory_space<vmem>>, vector<8x8xbf16>
    %cst_15 = arith.constant dense<0.000000e+00> : vector<8x8xf32>
    %41 = tpu.matmul %36, %38, %cst_15 {dimension_numbers = #tpu.dot_dimension_numbers<[1], [1], [0], [0], [0, 0, 1, 0], [], []>} : vector<8x8xbf16>, vector<8x8xbf16>, vector<8x8xf32> -> vector<8x8xf32>
    %cst_16 = arith.constant -1.000000e+30 : f32
    %42 = vector.broadcast %cst_16 : f32 to vector<8x8xf32>
    %43 = arith.select %32, %41, %42 : vector<8x8xi1>, vector<8x8xf32>
    %cst_17 = arith.constant dense<0xFF800000> : vector<8xf32>
    %44 = vector.multi_reduction <maximumf>, %43, %cst_17 [1] : vector<8x8xf32> to vector<8xf32>
    %45 = vector.shape_cast %44 : vector<8xf32> to vector<8x1xf32>
    %46 = vector.broadcast %45 : vector<8x1xf32> to vector<8x8xf32>
    %47 = arith.subf %43, %46 : vector<8x8xf32>
    %48 = math.exp %47 : vector<8x8xf32>
    %cst_18 = arith.constant dense<0.000000e+00> : vector<8xf32>
    %49 = vector.multi_reduction <add>, %48, %cst_18 [1] : vector<8x8xf32> to vector<8xf32>
    %50 = vector.shape_cast %49 : vector<8xf32> to vector<8x1xf32>
    %51 = tpu.reciprocal %50 {approx = true} : vector<8x1xf32> -> vector<8x1xf32>
    %52 = vector.broadcast %51 : vector<8x1xf32> to vector<8x8xf32>
    %53 = arith.mulf %48, %52 : vector<8x8xf32>
    %54 = arith.truncf %53 : vector<8x8xf32> to vector<8x8xbf16>
    %cst_19 = arith.constant dense<0.000000e+00> : vector<8x8xf32>
    %55 = tpu.matmul %54, %40, %cst_19 {dimension_numbers = #tpu.dot_dimension_numbers<[1], [0], [0], [1], [0, 0, 1, 1], [], []>} : vector<8x8xbf16>, vector<8x8xbf16>, vector<8x8xf32> -> vector<8x8xf32>
    %56 = arith.truncf %55 : vector<8x8xf32> to vector<8x8xbf16>
    %57 = arith.index_cast %34 : i32 to index
    %c0_20 = arith.constant 0 : index
    %58 = vector.load %arg15[%57, %c0_20] : memref<8x32xbf16, #tpu.memory_space<vmem>>, vector<8x8xbf16>
    tpu.vector_store %arg15[%57, %c0_20], %56 {strides = array<i32>} : memref<8x32xbf16, #tpu.memory_space<vmem>>, vector<8x8xbf16>,
    %59 = arith.index_cast %34 : i32 to index
    %c8 = arith.constant 8 : index
    %60 = vector.load %arg14[%59, %c8] : memref<8x96xbf16, #tpu.memory_space<vmem>>, vector<8x8xbf16>
    %61 = arith.index_cast %34 : i32 to index
    %c40 = arith.constant 40 : index
    %62 = vector.load %arg14[%61, %c40] : memref<8x96xbf16, #tpu.memory_space<vmem>>, vector<8x8xbf16>
    %63 = arith.index_cast %34 : i32 to index
    %c72 = arith.constant 72 : index
    %64 = vector.load %arg14[%63, %c72] : memref<8x96xbf16, #tpu.memory_space<vmem>>, vector<8x8xbf16>
    %cst_21 = arith.constant dense<0.000000e+00> : vector<8x8xf32>
    %65 = tpu.matmul %60, %62, %cst_21 {dimension_numbers = #tpu.dot_dimension_numbers<[1], [1], [0], [0], [0, 0, 1, 0], [], []>} : vector<8x8xbf16>, vector<8x8xbf16>, vector<8x8xf32> -> vector<8x8xf32>
    %cst_22 = arith.constant -1.000000e+30 : f32
    %66 = vector.broadcast %cst_22 : f32 to vector<8x8xf32>
    %67 = arith.select %32, %65, %66 : vector<8x8xi1>, vector<8x8xf32>
    %cst_23 = arith.constant dense<0xFF800000> : vector<8xf32>
    %68 = vector.multi_reduction <maximumf>, %67, %cst_23 [1] : vector<8x8xf32> to vector<8xf32>
    %69 = vector.shape_cast %68 : vector<8xf32> to vector<8x1xf32>
    %70 = vector.broadcast %69 : vector<8x1xf32> to vector<8x8xf32>
    %71 = arith.subf %67, %70 : vector<8x8xf32>
    %72 = math.exp %71 : vector<8x8xf32>
    %cst_24 = arith.constant dense<0.000000e+00> : vector<8xf32>
    %73 = vector.multi_reduction <add>, %72, %cst_24 [1] : vector<8x8xf32> to vector<8xf32>
    %74 = vector.shape_cast %73 : vector<8xf32> to vector<8x1xf32>
    %75 = tpu.reciprocal %74 {approx = true} : vector<8x1xf32> -> vector<8x1xf32>
    %76 = vector.broadcast %75 : vector<8x1xf32> to vector<8x8xf32>
    %77 = arith.mulf %72, %76 : vector<8x8xf32>
    %78 = arith.truncf %77 : vector<8x8xf32> to vector<8x8xbf16>
    %cst_25 = arith.constant dense<0.000000e+00> : vector<8x8xf32>
    %79 = tpu.matmul %78, %64, %cst_25 {dimension_numbers = #tpu.dot_dimension_numbers<[1], [0], [0], [1], [0, 0, 1, 1], [], []>} : vector<8x8xbf16>, vector<8x8xbf16>, vector<8x8xf32> -> vector<8x8xf32>
    %80 = arith.truncf %79 : vector<8x8xf32> to vector<8x8xbf16>
    %81 = arith.index_cast %34 : i32 to index
    %c8_26 = arith.constant 8 : index
    %82 = vector.load %arg15[%81, %c8_26] : memref<8x32xbf16, #tpu.memory_space<vmem>>, vector<8x8xbf16>
    tpu.vector_store %arg15[%81, %c8_26], %80 {strides = array<i32>} : memref<8x32xbf16, #tpu.memory_space<vmem>>, vector<8x8xbf16>,
    %83 = arith.index_cast %34 : i32 to index
    %c16 = arith.constant 16 : index
    %84 = vector.load %arg14[%83, %c16] : memref<8x96xbf16, #tpu.memory_space<vmem>>, vector<8x8xbf16>
    %85 = arith.index_cast %34 : i32 to index
    %c48 = arith.constant 48 : index
    %86 = vector.load %arg14[%85, %c48] : memref<8x96xbf16, #tpu.memory_space<vmem>>, vector<8x8xbf16>
    %87 = arith.index_cast %34 : i32 to index
    %c80 = arith.constant 80 : index
    %88 = vector.load %arg14[%87, %c80] : memref<8x96xbf16, #tpu.memory_space<vmem>>, vector<8x8xbf16>
    %cst_27 = arith.constant dense<0.000000e+00> : vector<8x8xf32>
    %89 = tpu.matmul %84, %86, %cst_27 {dimension_numbers = #tpu.dot_dimension_numbers<[1], [1], [0], [0], [0, 0, 1, 0], [], []>} : vector<8x8xbf16>, vector<8x8xbf16>, vector<8x8xf32> -> vector<8x8xf32>
    %cst_28 = arith.constant -1.000000e+30 : f32
    %90 = vector.broadcast %cst_28 : f32 to vector<8x8xf32>
    %91 = arith.select %32, %89, %90 : vector<8x8xi1>, vector<8x8xf32>
    %cst_29 = arith.constant dense<0xFF800000> : vector<8xf32>
    %92 = vector.multi_reduction <maximumf>, %91, %cst_29 [1] : vector<8x8xf32> to vector<8xf32>
    %93 = vector.shape_cast %92 : vector<8xf32> to vector<8x1xf32>
    %94 = vector.broadcast %93 : vector<8x1xf32> to vector<8x8xf32>
    %95 = arith.subf %91, %94 : vector<8x8xf32>
    %96 = math.exp %95 : vector<8x8xf32>
    %cst_30 = arith.constant dense<0.000000e+00> : vector<8xf32>
    %97 = vector.multi_reduction <add>, %96, %cst_30 [1] : vector<8x8xf32> to vector<8xf32>
    %98 = vector.shape_cast %97 : vector<8xf32> to vector<8x1xf32>
    %99 = tpu.reciprocal %98 {approx = true} : vector<8x1xf32> -> vector<8x1xf32>
    %100 = vector.broadcast %99 : vector<8x1xf32> to vector<8x8xf32>
    %101 = arith.mulf %96, %100 : vector<8x8xf32>
    %102 = arith.truncf %101 : vector<8x8xf32> to vector<8x8xbf16>
    %cst_31 = arith.constant dense<0.000000e+00> : vector<8x8xf32>
    %103 = tpu.matmul %102, %88, %cst_31 {dimension_numbers = #tpu.dot_dimension_numbers<[1], [0], [0], [1], [0, 0, 1, 1], [], []>} : vector<8x8xbf16>, vector<8x8xbf16>, vector<8x8xf32> -> vector<8x8xf32>
    %104 = arith.truncf %103 : vector<8x8xf32> to vector<8x8xbf16>
    %105 = arith.index_cast %34 : i32 to index
    %c16_32 = arith.constant 16 : index
    %106 = vector.load %arg15[%105, %c16_32] : memref<8x32xbf16, #tpu.memory_space<vmem>>, vector<8x8xbf16>
    tpu.vector_store %arg15[%105, %c16_32], %104 {strides = array<i32>} : memref<8x32xbf16, #tpu.memory_space<vmem>>, vector<8x8xbf16>,
    %107 = arith.index_cast %34 : i32 to index
    %c24 = arith.constant 24 : index
    %108 = vector.load %arg14[%107, %c24] : memref<8x96xbf16, #tpu.memory_space<vmem>>, vector<8x8xbf16>
    %109 = arith.index_cast %34 : i32 to index
    %c56 = arith.constant 56 : index
    %110 = vector.load %arg14[%109, %c56] : memref<8x96xbf16, #tpu.memory_space<vmem>>, vector<8x8xbf16>
    %111 = arith.index_cast %34 : i32 to index
    %c88 = arith.constant 88 : index
    %112 = vector.load %arg14[%111, %c88] : memref<8x96xbf16, #tpu.memory_space<vmem>>, vector<8x8xbf16>
    %cst_33 = arith.constant dense<0.000000e+00> : vector<8x8xf32>
    %113 = tpu.matmul %108, %110, %cst_33 {dimension_numbers = #tpu.dot_dimension_numbers<[1], [1], [0], [0], [0, 0, 1, 0], [], []>} : vector<8x8xbf16>, vector<8x8xbf16>, vector<8x8xf32> -> vector<8x8xf32>
    %cst_34 = arith.constant -1.000000e+30 : f32
    %114 = vector.broadcast %cst_34 : f32 to vector<8x8xf32>
    %115 = arith.select %32, %113, %114 : vector<8x8xi1>, vector<8x8xf32>
    %cst_35 = arith.constant dense<0xFF800000> : vector<8xf32>
    %116 = vector.multi_reduction <maximumf>, %115, %cst_35 [1] : vector<8x8xf32> to vector<8xf32>
    %117 = vector.shape_cast %116 : vector<8xf32> to vector<8x1xf32>
    %118 = vector.broadcast %117 : vector<8x1xf32> to vector<8x8xf32>
    %119 = arith.subf %115, %118 : vector<8x8xf32>
    %120 = math.exp %119 : vector<8x8xf32>
    %cst_36 = arith.constant dense<0.000000e+00> : vector<8xf32>
    %121 = vector.multi_reduction <add>, %120, %cst_36 [1] : vector<8x8xf32> to vector<8xf32>
    %122 = vector.shape_cast %121 : vector<8xf32> to vector<8x1xf32>
    %123 = tpu.reciprocal %122 {approx = true} : vector<8x1xf32> -> vector<8x1xf32>
    %124 = vector.broadcast %123 : vector<8x1xf32> to vector<8x8xf32>
    %125 = arith.mulf %120, %124 : vector<8x8xf32>
    %126 = arith.truncf %125 : vector<8x8xf32> to vector<8x8xbf16>
    %cst_37 = arith.constant dense<0.000000e+00> : vector<8x8xf32>
    %127 = tpu.matmul %126, %112, %cst_37 {dimension_numbers = #tpu.dot_dimension_numbers<[1], [0], [0], [1], [0, 0, 1, 1], [], []>} : vector<8x8xbf16>, vector<8x8xbf16>, vector<8x8xf32> -> vector<8x8xf32>
    %128 = arith.truncf %127 : vector<8x8xf32> to vector<8x8xbf16>
    %129 = arith.index_cast %34 : i32 to index
    %c24_38 = arith.constant 24 : index
    %130 = vector.load %arg15[%129, %c24_38] : memref<8x32xbf16, #tpu.memory_space<vmem>>, vector<8x8xbf16>
    tpu.vector_store %arg15[%129, %c24_38], %128 {strides = array<i32>} : memref<8x32xbf16, #tpu.memory_space<vmem>>, vector<8x8xbf16>,
    %c1_i32 = arith.constant 1 : i32
    %c0_39 = arith.constant 0 : index
    %c0_40 = arith.constant 0 : index
    %131 = vector.load %arg15[%c0_39, %c0_40] : memref<8x32xbf16, #tpu.memory_space<vmem>>, vector<8x32xbf16>
    %c0_41 = arith.constant 0 : index
    %c0_42 = arith.constant 0 : index
    %132 = vector.load %arg5[%c0_41, %c0_42] : memref<32x32xbf16, #tpu.memory_space<vmem>>, vector<32x32xbf16>
    %cst_43 = arith.constant dense<0.000000e+00> : vector<8x32xf32>
    %133 = tpu.matmul %131, %132, %cst_43 {dimension_numbers = #tpu.dot_dimension_numbers<[1], [0], [0], [1], [0, 0, 1, 1], [], []>} : vector<8x32xbf16>, vector<32x32xbf16>, vector<8x32xf32> -> vector<8x32xf32>
    %134 = arith.addf %0, %133 : vector<8x32xf32>
    %c0_44 = arith.constant 0 : index
    %c0_45 = arith.constant 0 : index
    %135 = vector.load %arg6[%c0_44, %c0_45] : memref<1x32xf32, #tpu.memory_space<vmem>>, vector<1x32xf32>
    %136 = vector.broadcast %135 : vector<1x32xf32> to vector<8x32xf32>
    %137 = arith.addf %134, %136 : vector<8x32xf32>
    %c0_46 = arith.constant 0 : index
    %c0_47 = arith.constant 0 : index
    %138 = vector.load %arg7[%c0_46, %c0_47] : memref<1x32xf32, #tpu.memory_space<vmem>>, vector<1x32xf32>
    %c0_48 = arith.constant 0 : index
    %c0_49 = arith.constant 0 : index
    %139 = vector.load %arg8[%c0_48, %c0_49] : memref<1x32xf32, #tpu.memory_space<vmem>>, vector<1x32xf32>
    %cst_50 = arith.constant dense<0.000000e+00> : vector<8xf32>
    %140 = vector.multi_reduction <add>, %137, %cst_50 [1] : vector<8x32xf32> to vector<8xf32>
    %141 = vector.shape_cast %140 : vector<8xf32> to vector<8x1xf32>
    %cst_51 = arith.constant 3.200000e+01 : f32
    %142 = vector.broadcast %cst_51 : f32 to vector<8x1xf32>
    %143 = arith.divf %141, %142 : vector<8x1xf32>
    %144 = vector.broadcast %143 : vector<8x1xf32> to vector<8x32xf32>
    %145 = arith.subf %137, %144 : vector<8x32xf32>
    %146 = arith.mulf %145, %145 : vector<8x32xf32>
    %cst_52 = arith.constant dense<0.000000e+00> : vector<8xf32>
    %147 = vector.multi_reduction <add>, %146, %cst_52 [1] : vector<8x32xf32> to vector<8xf32>
    %148 = vector.shape_cast %147 : vector<8xf32> to vector<8x1xf32>
    %cst_53 = arith.constant 3.200000e+01 : f32
    %149 = vector.broadcast %cst_53 : f32 to vector<8x1xf32>
    %150 = arith.divf %148, %149 : vector<8x1xf32>
    %151 = vector.broadcast %143 : vector<8x1xf32> to vector<8x32xf32>
    %152 = arith.subf %137, %151 : vector<8x32xf32>
    %cst_54 = arith.constant 9.99999974E-6 : f32
    %153 = vector.broadcast %cst_54 : f32 to vector<8x1xf32>
    %154 = arith.addf %150, %153 : vector<8x1xf32>
    %155 = math.rsqrt %154 : vector<8x1xf32>
    %156 = vector.broadcast %155 : vector<8x1xf32> to vector<8x32xf32>
    %157 = arith.mulf %152, %156 : vector<8x32xf32>
    %158 = vector.broadcast %138 : vector<1x32xf32> to vector<8x32xf32>
    %159 = arith.mulf %157, %158 : vector<8x32xf32>
    %160 = vector.broadcast %139 : vector<1x32xf32> to vector<8x32xf32>
    %161 = arith.addf %159, %160 : vector<8x32xf32>
    %162 = arith.truncf %161 : vector<8x32xf32> to vector<8x32xbf16>
    %cst_55 = arith.constant 0.000000e+00 : f32
    %163 = vector.broadcast %cst_55 : f32 to vector<8x32xf32>
    %c0_56 = arith.constant 0 : index
    %c0_57 = arith.constant 0 : index
    %164 = vector.load %arg9[%c0_56, %c0_57] : memref<32x128xbf16, #tpu.memory_space<vmem>>, vector<32x128xbf16>
    %cst_58 = arith.constant dense<0.000000e+00> : vector<8x128xf32>
    %165 = tpu.matmul %162, %164, %cst_58 {dimension_numbers = #tpu.dot_dimension_numbers<[1], [0], [0], [1], [0, 0, 1, 1], [], []>} : vector<8x32xbf16>, vector<32x128xbf16>, vector<8x128xf32> -> vector<8x128xf32>
    %c0_59 = arith.constant 0 : index
    %c0_60 = arith.constant 0 : index
    %166 = vector.load %arg10[%c0_59, %c0_60] : memref<1x128xf32, #tpu.memory_space<vmem>>, vector<1x128xf32>
    %167 = vector.broadcast %166 : vector<1x128xf32> to vector<8x128xf32>
    %168 = arith.addf %165, %167 : vector<8x128xf32>
    %cst_61 = arith.constant 5.000000e-01 : f32
    %169 = vector.broadcast %cst_61 : f32 to vector<8x128xf32>
    %170 = arith.mulf %169, %168 : vector<8x128xf32>
    %cst_62 = arith.constant 0.707106769 : f32
    %171 = vector.broadcast %cst_62 : f32 to vector<8x128xf32>
    %172 = arith.mulf %168, %171 : vector<8x128xf32>
    %cst_63 = arith.constant 0.000000e+00 : f32
    %173 = vector.broadcast %cst_63 : f32 to vector<8x128xf32>
    %174 = arith.cmpf oge, %172, %173 : vector<8x128xf32>
    %cst_64 = arith.constant 1.000000e+00 : f32
    %cst_65 = arith.constant -1.000000e+00 : f32
    %175 = vector.broadcast %cst_64 : f32 to vector<8x128xf32>
    %176 = vector.broadcast %cst_65 : f32 to vector<8x128xf32>
    %177 = arith.select %174, %175, %176 : vector<8x128xi1>, vector<8x128xf32>
    %178 = math.absf %172 : vector<8x128xf32>
    %cst_66 = arith.constant 0.327591091 : f32
    %179 = vector.broadcast %cst_66 : f32 to vector<8x128xf32>
    %180 = arith.mulf %179, %178 : vector<8x128xf32>
    %cst_67 = arith.constant 1.000000e+00 : f32
    %181 = vector.broadcast %cst_67 : f32 to vector<8x128xf32>
    %182 = arith.addf %181, %180 : vector<8x128xf32>
    %183 = tpu.reciprocal %182 {approx = true} : vector<8x128xf32> -> vector<8x128xf32>
    %cst_68 = arith.constant 1.06140542 : f32
    %184 = vector.broadcast %cst_68 : f32 to vector<8x128xf32>
    %185 = arith.mulf %184, %183 : vector<8x128xf32>
    %cst_69 = arith.constant -1.45315206 : f32
    %186 = vector.broadcast %cst_69 : f32 to vector<8x128xf32>
    %187 = arith.addf %185, %186 : vector<8x128xf32>
    %188 = arith.mulf %187, %183 : vector<8x128xf32>
    %cst_70 = arith.constant 1.42141378 : f32
    %189 = vector.broadcast %cst_70 : f32 to vector<8x128xf32>
    %190 = arith.addf %188, %189 : vector<8x128xf32>
    %191 = arith.mulf %190, %183 : vector<8x128xf32>
    %cst_71 = arith.constant -0.284496725 : f32
    %192 = vector.broadcast %cst_71 : f32 to vector<8x128xf32>
    %193 = arith.addf %191, %192 : vector<8x128xf32>
    %194 = arith.mulf %193, %183 : vector<8x128xf32>
    %cst_72 = arith.constant 0.254829586 : f32
    %195 = vector.broadcast %cst_72 : f32 to vector<8x128xf32>
    %196 = arith.addf %194, %195 : vector<8x128xf32>
    %197 = arith.mulf %196, %183 : vector<8x128xf32>
    %cst_73 = arith.constant 0.000000e+00 : f32
    %198 = vector.broadcast %cst_73 : f32 to vector<8x128xf32>
    %199 = arith.subf %198, %178 : vector<8x128xf32>
    %200 = arith.mulf %199, %178 : vector<8x128xf32>
    %201 = math.exp %200 : vector<8x128xf32>
    %202 = arith.mulf %197, %201 : vector<8x128xf32>
    %cst_74 = arith.constant 1.000000e+00 : f32
    %203 = vector.broadcast %cst_74 : f32 to vector<8x128xf32>
    %204 = arith.subf %203, %202 : vector<8x128xf32>
    %205 = arith.mulf %177, %204 : vector<8x128xf32>
    %cst_75 = arith.constant 1.000000e+00 : f32
    %206 = vector.broadcast %cst_75 : f32 to vector<8x128xf32>
    %207 = arith.addf %206, %205 : vector<8x128xf32>
    %208 = arith.mulf %170, %207 : vector<8x128xf32>
    %209 = arith.truncf %208 : vector<8x128xf32> to vector<8x128xbf16>
    %c0_76 = arith.constant 0 : index
    %c0_77 = arith.constant 0 : index
    %210 = vector.load %arg11[%c0_76, %c0_77] : memref<128x32xbf16, #tpu.memory_space<vmem>>, vector<128x32xbf16>
    %cst_78 = arith.constant dense<0.000000e+00> : vector<8x32xf32>
    %211 = tpu.matmul %209, %210, %cst_78 {dimension_numbers = #tpu.dot_dimension_numbers<[1], [0], [0], [1], [0, 0, 1, 1], [], []>} : vector<8x128xbf16>, vector<128x32xbf16>, vector<8x32xf32> -> vector<8x32xf32>
    %212 = arith.addf %163, %211 : vector<8x32xf32>
    %213 = arith.addf %137, %212 : vector<8x32xf32>
    %c0_79 = arith.constant 0 : index
    %c0_80 = arith.constant 0 : index
    %214 = vector.load %arg12[%c0_79, %c0_80] : memref<1x32xf32, #tpu.memory_space<vmem>>, vector<1x32xf32>
    %215 = vector.broadcast %214 : vector<1x32xf32> to vector<8x32xf32>
    %216 = arith.addf %213, %215 : vector<8x32xf32>
    %c0_81 = arith.constant 0 : index
    %c0_82 = arith.constant 0 : index
    %217 = vector.load %arg13[%c0_81, %c0_82] : memref<8x32xf32, #tpu.memory_space<vmem>>, vector<8x32xf32>
    tpu.vector_store %arg13[%c0_81, %c0_82], %216 {strides = array<i32>} : memref<8x32xf32, #tpu.memory_space<vmem>>, vector<8x32xf32>,
    return
  }
  func.func @transform_0(%arg0: i32) -> (i32, i32) {
    %c0_i32 = arith.constant 0 : i32
    %c0_i32_0 = arith.constant 0 : i32
    return %arg0, %c0_i32 : i32, i32
  }
  func.func @transform_1(%arg0: i32) -> (i32, i32) {
    %c0_i32 = arith.constant 0 : i32
    %c0_i32_0 = arith.constant 0 : i32
    %c0_i32_1 = arith.constant 0 : i32
    return %c0_i32, %c0_i32_0 : i32, i32
  }
  func.func @transform_2(%arg0: i32) -> (i32, i32) {
    %c0_i32 = arith.constant 0 : i32
    %c0_i32_0 = arith.constant 0 : i32
    %c0_i32_1 = arith.constant 0 : i32
    return %c0_i32, %c0_i32_0 : i32, i32
  }
  func.func @transform_3(%arg0: i32) -> (i32, i32) {
    %c0_i32 = arith.constant 0 : i32
    %c0_i32_0 = arith.constant 0 : i32
    %c0_i32_1 = arith.constant 0 : i32
    return %c0_i32, %c0_i32_0 : i32, i32
  }
  func.func @transform_4(%arg0: i32) -> (i32, i32) {
    %c0_i32 = arith.constant 0 : i32
    %c0_i32_0 = arith.constant 0 : i32
    %c0_i32_1 = arith.constant 0 : i32
    return %c0_i32, %c0_i32_0 : i32, i32
  }
  func.func @transform_5(%arg0: i32) -> (i32, i32) {
    %c0_i32 = arith.constant 0 : i32
    %c0_i32_0 = arith.constant 0 : i32
    %c0_i32_1 = arith.constant 0 : i32
    return %c0_i32, %c0_i32_0 : i32, i32
  }
  func.func @transform_6(%arg0: i32) -> (i32, i32) {
    %c0_i32 = arith.constant 0 : i32
    %c0_i32_0 = arith.constant 0 : i32
    %c0_i32_1 = arith.constant 0 : i32
    return %c0_i32, %c0_i32_0 : i32, i32
  }
  func.func @transform_7(%arg0: i32) -> (i32, i32) {
    %c0_i32 = arith.constant 0 : i32
    %c0_i32_0 = arith.constant 0 : i32
    %c0_i32_1 = arith.constant 0 : i32
    return %c0_i32, %c0_i32_0 : i32, i32
  }
  func.func @transform_8(%arg0: i32) -> (i32, i32) {
    %c0_i32 = arith.constant 0 : i32
    %c0_i32_0 = arith.constant 0 : i32
    %c0_i32_1 = arith.constant 0 : i32
    return %c0_i32, %c0_i32_0 : i32, i32
  }
  func.func @transform_9(%arg0: i32) -> (i32, i32) {
    %c0_i32 = arith.constant 0 : i32
    %c0_i32_0 = arith.constant 0 : i32
    %c0_i32_1 = arith.constant 0 : i32
    return %c0_i32, %c0_i32_0 : i32, i32
  }
  func.func @transform_10(%arg0: i32) -> (i32, i32) {
    %c0_i32 = arith.constant 0 : i32
    %c0_i32_0 = arith.constant 0 : i32
    %c0_i32_1 = arith.constant 0 : i32
    return %c0_i32, %c0_i32_0 : i32, i32
  }
  func.func @transform_11(%arg0: i32) -> (i32, i32) {
    %c0_i32 = arith.constant 0 : i32
    %c0_i32_0 = arith.constant 0 : i32
    %c0_i32_1 = arith.constant 0 : i32
    return %c0_i32, %c0_i32_0 : i32, i32
  }
  func.func @transform_12(%arg0: i32) -> (i32, i32) {
    %c0_i32 = arith.constant 0 : i32
    %c0_i32_0 = arith.constant 0 : i32
    return %arg0, %c0_i32 : i32, i32
  }
}

</mosaic_0001>

<bundles_post_ra>
// kernel: tpu_custom_call.1
= control target key start
LH: loop header
LB: loop body
LE: loop exit
PB: predicated region body
PF: predicated region fallthrough
CT: control target
= control target key end

     0   :  { %s2073_s0 = inlined_call_operand.vmem [shape: f32[16,32], index: 0, kind: input, shape index: {}]   ;;  %s2074_s1 = inlined_call_operand.vmem [shape: f32[1,32], index: 1, kind: input, shape index: {}]   ;;  %s2075_s2 = inlined_call_operand.vmem [shape: f32[1,32], index: 2, kind: input, shape index: {}]   ;;  %s2076_s3 = inlined_call_operand.vmem [shape: bf16[32,96], index: 3, kind: input, shape index: {}]   ;;  %s2077_s4 = inlined_call_operand.vmem [shape: bf16[32,32], index: 4, kind: input, shape index: {}]   ;;  %s2078_s5 = inlined_call_operand.vmem [shape: f32[1,32], index: 5, kind: input, shape index: {}]   ;;  %s2079_s6 = inlined_call_operand.vmem [shape: f32[1,32], index: 6, kind: input, shape index: {}]   ;;  %s2080_s7 = inlined_call_operand.vmem [shape: f32[1,32], index: 7, kind: input, shape index: {}]   ;;  %s2081_s8 = inlined_call_operand.vmem [shape: bf16[32,128], index: 8, kind: input, shape index: {}]   ;;  %s2082_s9 = inlined_call_operand.vmem [shape: f32[1,128], index: 9, kind: input, shape index: {}]   ;;  %s2083_s10 = inlined_call_operand.vmem [shape: bf16[128,32], index: 10, kind: input, shape index: {}]   ;;  %s2084_s11 = inlined_call_operand.vmem [shape: f32[1,32], index: 11, kind: input, shape index: {}]   ;;  %s2085_s12 = inlined_call_operand.hbm [shape: f32[16,32], index: 12, kind: output, shape index: {}]  }
   0x1   :  { %2086 = sst [smem:[#allocation7_spill]] %s2073_s0 }
   0x2   :  { %2087 = sst [smem:[#allocation8_spill]] %s2074_s1 }
   0x3   :  { %17 = vsyncpa [#allocation5], 0 }
   0x4   :  { %19 = vsyncpa [#allocation5 + $0x1], 0  ;;  %s1800_s21 = smov 0   ;;  %s1802_s22 = smov 0  }
   0x5   :  { %s1804_s23 = smov 0   ;;  %s1806_s24 = smov 0  }
   0x6 LB: > { %s1821_s25 = sadd.s32 4294967295, %s1715_s24   ;;  %s1379_s26 = sadd.s32 4294967294, %s1715_s24   ;;  %s1715_s24 = sphi %s1806_s24, %s2095_s24   ;;  %s1711_s23 = sphi %s1804_s23, %s2094_s23   ;;  %s1707_s22 = sphi %s1802_s22, %s2093_s22   ;;  %s1703_s21 = sphi %s1800_s21, %s2092_s21  }
   0x7   : > { %s1825_s27 = sadd.s32 1, %s1715_s24   ;;  %s289_s28 = sadd.s32 1, %s1711_s23 }
   0x8   : > { %s286_s29 = ssub.s32 %s1715_s24, %s1825_s27  ;;  %p299_p0 = scmp.ne.s32.totalorder %s1711_s23, %s1707_s22 }
   0x9   : > { %p287_p1 = scmp.eq.s32.totalorder %s286_s29, 0  ;;  %p300_p2 = scmp.eq.s32.totalorder %s1821_s25, 1 }
   0xa   : > { %p305_p3 = scmp.ne.s32.totalorder %s1707_s22, %s1703_s21  ;;  %p306_p4 = scmp.eq.s32.totalorder %s1379_s26, 1 }
   0xb   : > { %s1836_s30 = scalar_select %p287_p1, %s1711_s23, %s289_s28  }
   0xc   : > { %p1838_p5 = por %p300_p2, %p299_p0  ;;  %p1842_p6 = por %p306_p4, %p305_p3 }
   0xd   : > { %p1382_p7 = scmp.ge.s32.totalorder %s1715_s24, 1  ;;  %p364_p8 = scmp.lt.s32.totalorder %s1715_s24, 3 }
   0xf   : > { %p365_p9 = pnand %p1382_p7, %p364_p8 }
  0x10   : > { %p405_p10 = scmp.lt.s32.totalorder (!%p365_p9), %s1821_s25, 1  ;;  %s2090_s0 = sld [smem:[#allocation7_spill]] (!%p365_p9) }
  0x11   : > { %368 = sbr.rel (%p365_p9) target bundleno = 2518 (0x9d6), region = 68  ;;  %s2091_s1 = sld [smem:[#allocation8_spill]] (!%p365_p9) }
  0x12   : > { %s1720_s20 = smov (!%p365_p9), 96   ;;  %s1721_s26 = smov (!%p365_p9), 88  }
  0x13   : > { %s1722_s28 = smov (!%p365_p9), 80   ;;  %s1723_s29 = smov (!%p365_p9), 112  }
  0x14   : > { %s1726_s17 = smov (!%p365_p9), 64   ;;  %s1727_s18 = smov (!%p365_p9), 56  }
  0x16   : > { %s406_s15 = scalar_select %p405_p10, %s1821_s25, 1  ;;  %vm413_vm0 = vcmask 261120   ;;  %v1613_v7 = vld [vmem:[%s2076_s3 + $0x8] sm:$0xff]   ;;  %v1717_v8 = vmov 0.0   ;;  %vm1718_vm1 = vmmov 0   ;;  %v1614_v9 = vld [vmem:[%s2076_s3] sm:$0xff]   ;;  %v505_v41 = vlaneseq }
  0x17   : > { %1465 = vmatprep.subr.bf16.mxu0 %v1717_v8  ;;  %1469 = vmatprep.mubr.msk.bf16.mxu0 %vm1718_vm1, %v1717_v8  ;;  %v1385_v14 = vld [vmem:[%s2091_s1] ss:$0 sm:$0xff]  ;;  %vm503_vm2 = vcmask 781312   ;;  %vm516_vm3 = vcmask 64512   ;;  %vm581_vm5 = vcmask 1043456   ;;  %vm626_vm6 = vcmask 60416  }
  0x18   : > { %s1384_s16 = sshll.u32 %s406_s15, 3  ;;  %1466 = vmatpush3.bf16.msra.mxu0 %v1613_v7  ;;  %1485 = vmatprep.subr.bf16.mxu1 %v1717_v8  ;;  %v1386_v16 = vld [vmem:[%s2075_s2] ss:$0 sm:$0xff]  ;;  %s1724_s15 = smov 72   ;;  %v506_v42 = vshrl.u32 %v505_v41, 7  ;;  %v508_v43 = vand.u32 127, %v505_v41 }
  0x19   : > { %s408_s19 = scalar_lea.vmem %s2090_s0, %s1384_s16  ;;  %1467 = vmatprep.subr.bf16.mxu0 %v1717_v8  ;;  %1487 = vmatprep.mubr.msk.bf16.mxu1 %vm1718_vm1, %v1717_v8  ;;  %s1725_s16 = smov 104   ;;  %vm750_vm7 = vcmask 126016   ;;  %vm874_vm8 = vcmask 191616   ;;  %vm998_vm9 = vcmask 257216  }
  0x1a   : > { %v1853_v0 = vld [vmem:[%s408_s19] sm:$0xff]  ;;  %s1719_s19 = smov 120   ;;  %vm509_vm4 = vcmp.le.s32.totalorder %v508_v43, %v506_v42 }
  0x1b   : > { %v414_v1 = vsel %vm413_vm0, %v1853_v0, 0.0 }
  0x1c   : > { %415 = vadd.xlane.f32.xlu0 %v414_v1  ;;  %1468 = vmatpush3.bf16.msra.mxu0 %v1614_v9 }
  0x1d   : > { %1473 = vmatprep.subr.bf16.mxu0 %v1717_v8 }
  0xa5   : > { %v416_v2 = vpop.xlane.xlu0 %415 }
  0xa6   : > { %v418_v3 = vmul.f32 0.03125, %v416_v2 }
  0xa8   : > { %v419_v4 = vsub.f32 %v1853_v0, %v418_v3 }
  0xaa   : > { %v420_v5 = vmul.f32 %v419_v4, %v419_v4 }
  0xac   : > { %v421_v6 = vsel %vm413_vm0, %v420_v5, 0.0 }
  0xad   : > { %422 = vadd.xlane.f32.xlu0 %v421_v6 }
 0x136   : > { %v423_v10 = vpop.xlane.xlu0 %422 }
 0x137   : > { %v424_v11 = vmul.f32 0.03125, %v423_v10 }
 0x139   : > { %v425_v12 = vadd.f32 1e-05, %v424_v11 }
 0x13b   : > { %1631 = vrsqrt.f32 %v425_v12 }
 0x148   : > { %v1632_v13 = vpop.eup %1631 }
 0x149   : > { %v427_v15 = vmul.f32 %v1632_v13, %v419_v4 }
 0x14b   : > { %v434_v17 = vmul.f32 %v1385_v14, %v427_v15 }
 0x14d   : > { %v441_v18 = vadd.f32 %v1386_v16, %v434_v17 }
 0x14f   : > { %v442_v19 = vpack.c.bf16 %v441_v18, %v441_v18 }
 0x151   : > { %1470 = vmatmul.mubr.msk.bf16.vlgmr.msra.gmra.mxu0 %vm413_vm0, %v442_v19 }
 0x152   : > { %1475 = vmatprep.mubr.msk.bf16.mxu0 %vm1718_vm1, %v1717_v8 }
 0x211   : > { %v496_v20 = vpop.f32.mrf.mxu0 }
 0x212   : > { %v502_v21 = vpack.c.bf16 %v496_v20, %v496_v20 }
 0x213   : > { %v1471_v22 = vpop.f32.mrf.mxu0 }
 0x214   : > { %504 = vst.msk [vmem:[#allocation2] sm:$0xf] %vm503_vm2, %v502_v21 }
 0x215   : > { %v499_v23 = vpop.f32.mrf.mxu0 }
 0x217   : > { %v1472_v24 = vpop.f32.mrf.mxu0 }
 0x21b   : > { %v1882_v25 = vld [vmem:[#allocation2] ss:$0 sps:$4 sm:$0xff]  }
 0x21c   : > { %v510_v26 = vld [vmem:[#allocation2] sm:$0xf]  ;;  %632 = vrot.lane.b32.xlu0 %v1882_v25, %s1719_s19  ;;  %s1728_s19 = smov 48  }
 0x21d   : > { %v1884_v27 = vcombine.low %v510_v26, %v510_v26  ;;  %v1889_v28 = vld [vmem:[#allocation2] ss:$0 sps:$4 sm:$0xff]  }
 0x21e   : > { %v1893_v29 = vld [vmem:[#allocation2] ss:$0 sps:$4 sm:$0xff]  }
 0x21f   : > { %514 = vrot.lane.b32.xlu1 %v1884_v27, %s1720_s20  ;;  %s1729_s20 = smov 40  }
 0x223   : > { %634 = vrot.lane.b32.xlu1 %v1882_v25, %s1721_s26  ;;  %s1730_s26 = smov 8  }
 0x227   : > { %758 = vrot.lane.b32.xlu1 %v1889_v28, %s1722_s28  ;;  %s1734_s28 = smov [#allocation4]  }
 0x22b   : > { %756 = vrot.lane.b32.xlu1 %v1889_v28, %s1723_s29  ;;  %s1659_s29 = sshll.u32 %s1734_s28, 4  ;;  %s1660_s29 = int_to_ptr.vmem [resolvable:$false] %s1659_s29 }
 0x22f   : > { %882 = vrot.lane.b32.xlu1 %v1893_v29, %s1724_s15  ;;  %s1425_s15 = sshll.u32 %s1821_s25, 7 }
 0x230   : > { %s2031_s0 = scalar_lea.hbm %s2085_s12, %s1425_s15  ;;  %s1661_s15 = scalar_lea.vmem %s1660_s29, 256 }
 0x233   : > { %880 = vrot.lane.b32.xlu1 %v1893_v29, %s1725_s16 }
 0x28e   : > { %v633_v35 = vpop.permute.xlu0 %632 }
 0x291   : > { %v515_v30 = vpop.permute.xlu1 %514 }
 0x292   : > { %v521_v31 = vsel %vm516_vm3, %v515_v30, 0 }
 0x293   : > { %1474 = vmatpush3.bf16.xpose.msra.mxu0 %v521_v31 }
 0x294   : > { %1479 = vmatprep.subr.bf16.mxu0 %v1717_v8 }
 0x295   : > { %v635_v32 = vpop.permute.xlu1 %634 }
 0x296   : > { %v640_v33 = vsel %vm516_vm3, %v635_v32, 0 }
 0x297   : > { %1486 = vmatpush3.bf16.xpose.msra.mxu1 %v640_v33 }
 0x298   : > { %1497 = vmatprep.subr.bf16.mxu1 %v1717_v8 }
 0x299   : > { %v759_v34 = vpop.permute.xlu1 %758 }
 0x29a   : > { %1476 = vmatmul.mubr.msk.bf16.vlgmr.msra.gmra.mxu0 %vm516_vm3, %v510_v26  ;;  %v764_v37 = vsel %vm516_vm3, %v759_v34, 0 }
 0x29b   : > { %1481 = vmatprep.mubr.msk.bf16.mxu0 %vm1718_vm1, %v1717_v8 }
 0x29d   : > { %v757_v36 = vpop.permute.xlu1 %756 }
 0x29e   : > { %1488 = vmatmul.mubr.msk.bf16.vlgmr.msra.gmra.mxu1 %vm516_vm3, %v633_v35 }
 0x29f   : > { %1498 = vmatpush3.bf16.xpose.msra.mxu1 %v764_v37  ;;  %1499 = vmatprep.mubr.msk.bf16.mxu1 %vm1718_vm1, %v1717_v8 }
 0x2a0   : > { %1509 = vmatprep.subr.bf16.mxu1 %v1717_v8 }
 0x2a1   : > { %v883_v38 = vpop.permute.xlu1 %882 }
 0x2a2   : > { %v888_v39 = vsel %vm516_vm3, %v883_v38, 0 }
 0x2a5   : > { %v881_v40 = vpop.permute.xlu1 %880 }
 0x2a6   : > { %1500 = vmatmul.mubr.msk.bf16.vlgmr.msra.gmra.mxu1 %vm516_vm3, %v757_v36 }
 0x2a7   : > { %1510 = vmatpush3.bf16.xpose.msra.mxu1 %v888_v39  ;;  %1511 = vmatprep.mubr.msk.bf16.mxu1 %vm1718_vm1, %v1717_v8 }
 0x2a8   : > { %1521 = vmatprep.subr.bf16.mxu1 %v1717_v8 }
 0x2ae   : > { %1512 = vmatmul.mubr.msk.bf16.vlgmr.msra.gmra.mxu1 %vm516_vm3, %v881_v40 }
 0x2af   : > { %1525 = vmatprep.mubr.msk.bf16.mxu1 %vm1718_vm1, %v1717_v8 }
 0x35a   : > { %v557_v44 = vpop.f32.mrf.mxu0 }
 0x35b   : > { %v563_v45 = vsel %vm509_vm4, %v557_v44, -1e+30 }
 0x35c   : > { %v1477_v46 = vpop.f32.mrf.mxu0  ;;  %v564_v47 = vsel %vm516_vm3, %v563_v45, -inf }
 0x35d   : > { %565 = vmax.xlane.f32.xlu1 %v564_v47 }
 0x35e   : > { %v560_v48 = vpop.f32.mrf.mxu0  ;;  %v676_v49 = vpop.f32.mrf.mxu1 }
 0x35f   : > { %v682_v50 = vsel %vm509_vm4, %v676_v49, -1e+30 }
 0x360   : > { %v1478_v51 = vpop.f32.mrf.mxu0  ;;  %v1489_v52 = vpop.f32.mrf.mxu1  ;;  %v683_v53 = vsel %vm516_vm3, %v682_v50, -inf }
 0x361   : > { %684 = vmax.xlane.f32.xlu0 %v683_v53 }
 0x362   : > { %v679_v54 = vpop.f32.mrf.mxu1 }
 0x364   : > { %v1490_v55 = vpop.f32.mrf.mxu1 }
 0x366   : > { %v800_v56 = vpop.f32.mrf.mxu1 }
 0x367   : > { %v806_v57 = vsel %vm509_vm4, %v800_v56, -1e+30 }
 0x368   : > { %v1501_v58 = vpop.f32.mrf.mxu1  ;;  %v807_v59 = vsel %vm516_vm3, %v806_v57, -inf }
 0x369   : > { %808 = vmax.xlane.f32.xlu1 %v807_v59 }
 0x36a   : > { %v803_v60 = vpop.f32.mrf.mxu1 }
 0x36b   : > { %v1619_v60 = vld [vmem:[%s2077_s4 + $0x8] sm:$0xff]  }
 0x36c   : > { %v1502_v61 = vpop.f32.mrf.mxu1  ;;  %1522 = vmatpush3.bf16.msra.mxu1 %v1619_v60 }
 0x36d   : > { %1523 = vmatprep.subr.bf16.mxu1 %v1717_v8 }
 0x36e   : > { %v924_v62 = vpop.f32.mrf.mxu1 }
 0x36f   : > { %v930_v63 = vsel %vm509_vm4, %v924_v62, -1e+30  ;;  %v1620_v62 = vld [vmem:[%s2077_s4] sm:$0xff]  }
 0x370   : > { %v1513_v1 = vpop.f32.mrf.mxu1  ;;  %v931_v2 = vsel %vm516_vm3, %v930_v63, -inf  ;;  %1524 = vmatpush3.bf16.msra.mxu1 %v1620_v62 }
 0x371   : > { %932 = vmax.xlane.f32.xlu0 %v931_v2  ;;  %1537 = vmatprep.subr.bf16.mxu1 %v1717_v8 }
 0x372   : > { %v927_v3 = vpop.f32.mrf.mxu1 }
 0x374   : > { %v1514_v4 = vpop.f32.mrf.mxu1 }
 0x3e6   : > { %v566_v5 = vpop.xlane.xlu1 %565 }
 0x3e7   : > { %v567_v6 = vsub.f32 %v563_v45, %v566_v5 }
 0x3e9   : > { %v568_v7 = vmul.f32 1.442695, %v567_v6 }
 0x3ea   : > { %v685_v9 = vpop.xlane.xlu0 %684 }
 0x3eb   : > { %1633 = vpow2.f32 %v568_v7  ;;  %v686_v10 = vsub.f32 %v682_v50, %v685_v9 }
 0x3ed   : > { %v687_v11 = vmul.f32 1.442695, %v686_v10 }
 0x3ef   : > { %1635 = vpow2.f32 %v687_v11 }
 0x3f2   : > { %v809_v21 = vpop.xlane.xlu1 %808 }
 0x3f3   : > { %v810_v22 = vsub.f32 %v806_v57, %v809_v21 }
 0x3f5   : > { %v811_v23 = vmul.f32 1.442695, %v810_v22 }
 0x3f8   : > { %v1634_v12 = vpop.eup %1633 }
 0x3f9   : > { %v570_v13 = vsel %vm516_vm3, %v1634_v12, 0.0 }
 0x3fa   : > { %v933_v14 = vpop.xlane.xlu0 %932  ;;  %571 = vadd.xlane.f32.xlu1 %v570_v13 }
 0x3fb   : > { %v934_v15 = vsub.f32 %v930_v63, %v933_v14 }
 0x3fc   : > { %v1636_v16 = vpop.eup %1635 }
 0x3fd   : > { %v935_v17 = vmul.f32 1.442695, %v934_v15  ;;  %v689_v18 = vsel %vm516_vm3, %v1636_v16, 0.0  ;;  %v1408_v15 = vld [vmem:[%s2078_s5] ss:$0 sm:$0xff] }
 0x3fe   : > { %690 = vadd.xlane.f32.xlu0 %v689_v18 }
 0x3ff   : > { %1637 = vpow2.f32 %v935_v17 }
 0x400   : > { %1639 = vpow2.f32 %v811_v23 }
 0x40b   : > { %576 = vrot.lane.b32.xlu1 %v1884_v27, %s1726_s17  ;;  %s1731_s17 = smov 16  }
 0x40c   : > { %v1638_v19 = vpop.eup %1637 }
 0x40d   : > { %v937_v20 = vsel %vm516_vm3, %v1638_v19, 0.0  ;;  %v1640_v24 = vpop.eup %1639 }
 0x40e   : > { %938 = vadd.xlane.f32.xlu0 %v937_v20  ;;  %v813_v26 = vsel %vm516_vm3, %v1640_v24, 0.0 }
 0x424   : > { %695 = vrot.lane.b32.xlu0 %v1882_v25, %s1727_s18  ;;  %s1732_s18 = smov 24  }
 0x42f   : > { %814 = vadd.xlane.f32.xlu1 %v813_v26 }
 0x440   : > { %819 = vrot.lane.b32.xlu1 %v1889_v28, %s1728_s19 }
 0x444   : > { %943 = vrot.lane.b32.xlu1 %v1893_v29, %s1729_s20  ;;  %s402_s20 = sand.u32 1, %s1707_s22  }
 0x445   : > { %s1307_s25 = scalar_lea.sflag [#allocation5], %s402_s20 }
 0x483   : > { %v572_v27 = vpop.xlane.xlu1 %571 }
 0x484   : > { %1641 = vrcp.f32 %v572_v27 }
 0x487   : > { %v691_v30 = vpop.xlane.xlu0 %690  ;;  %v577_v31 = vpop.permute.xlu1 %576 }
 0x488   : > { %v583_v32 = vsel %vm581_vm5, %v577_v31, 0  ;;  %1643 = vrcp.f32 %v691_v30  ;;  %v1622_v30 = vld [vmem:[%s2081_s8] sm:$0xff]  }
 0x489   : > { %1480 = vmatpush3.bf16.msra.mxu0 %v583_v32 }
 0x48a   : > { %1491 = vmatprep.subr.bf16.mxu0 %v1717_v8 }
 0x491   : > { %v1642_v25 = vpop.eup %1641 }
 0x492   : > { %v574_v33 = vmul.f32 %v1642_v25, %v1634_v12 }
 0x494   : > { %v575_v34 = vpack.c.bf16 %v574_v33, %v574_v33 }
 0x495   : > { %v1644_v28 = vpop.eup %1643 }
 0x496   : > { %1482 = vmatmul.mubr.msk.bf16.vlgmr.msra.gmra.mxu0 %vm516_vm3, %v575_v34  ;;  %v693_v29 = vmul.f32 %v1644_v28, %v1636_v16  ;;  %v1409_v34 = vld [vmem:[%s2079_s6] ss:$0 sm:$0xff] }
 0x497   : > { %v939_v35 = vpop.xlane.xlu0 %938  ;;  %1493 = vmatprep.mubr.msk.bf16.mxu0 %vm1718_vm1, %v1717_v8 }
 0x498   : > { %v694_v38 = vpack.c.bf16 %v693_v29, %v693_v29 }
 0x49b   : > { %v696_v36 = vpop.permute.xlu0 %695 }
 0x49c   : > { %v701_v37 = vsel %vm581_vm5, %v696_v36, 0 }
 0x49d   : > { %1492 = vmatpush3.bf16.msra.mxu0 %v701_v37 }
 0x49e   : > { %1503 = vmatprep.subr.bf16.mxu0 %v1717_v8 }
 0x4a0   : > { %1494 = vmatmul.mubr.msk.bf16.vlgmr.msra.gmra.mxu0 %vm516_vm3, %v694_v38  ;;  %v1623_v38 = vld [vmem:[%s2083_s10 + $0x38] sm:$0xff]  }
 0x4a1   : > { %1505 = vmatprep.mubr.msk.bf16.mxu0 %vm1718_vm1, %v1717_v8 }
 0x4b8   : > { %v815_v39 = vpop.xlane.xlu1 %814 }
 0x4b9   : > { %1645 = vrcp.f32 %v815_v39  ;;  %v1624_v39 = vld [vmem:[%s2083_s10 + $0x30] sm:$0xff]  }
 0x4ba   : > { %1647 = vrcp.f32 %v939_v35  ;;  %v1410_v35 = vld [vmem:[%s2080_s7] ss:$0 sm:$0xff] }
 0x4bc   : > { %v820_v40 = vpop.permute.xlu1 %819 }
 0x4bd   : > { %v825_v41 = vsel %vm581_vm5, %v820_v40, 0  ;;  %v1625_v40 = vld [vmem:[%s2083_s10 + $0x28] sm:$0xff]  }
 0x4be   : > { %1504 = vmatpush3.bf16.msra.mxu0 %v825_v41  ;;  %v1626_v41 = vld [vmem:[%s2083_s10 + $0x20] sm:$0xff]  }
 0x4bf   : > { %1515 = vmatprep.subr.bf16.mxu0 %v1717_v8 }
 0x4c0   : > { %v944_v44 = vpop.permute.xlu1 %943 }
 0x4c1   : > { %v949_v47 = vsel %vm581_vm5, %v944_v44, 0  ;;  %v1629_v44 = vld [vmem:[%s2083_s10 + $0x8] sm:$0xff]  }
 0x4c6   : > { %v1646_v42 = vpop.eup %1645 }
 0x4c7   : > { %v817_v43 = vmul.f32 %v1646_v42, %v1640_v24  ;;  %v1648_v46 = vpop.eup %1647  ;;  %v1627_v42 = vld [vmem:[%s2083_s10 + $0x18] sm:$0xff]  }
 0x4c8   : > { %v941_v48 = vmul.f32 %v1648_v46, %v1638_v19  ;;  %v1411_v46 = vld [vmem:[%s2082_s9] ss:$0 sm:$0xff] }
 0x4c9   : > { %v818_v45 = vpack.c.bf16 %v817_v43, %v817_v43  ;;  %v1628_v43 = vld [vmem:[%s2083_s10 + $0x10] sm:$0xff]  }
 0x4ca   : > { %v942_v49 = vpack.c.bf16 %v941_v48, %v941_v48 }
 0x4cb   : > { %1506 = vmatmul.mubr.msk.bf16.vlgmr.msra.gmra.mxu0 %vm516_vm3, %v818_v45  ;;  %v1630_v45 = vld [vmem:[%s2083_s10] sm:$0xff]  }
 0x4cc   : > { %1516 = vmatpush3.bf16.msra.mxu0 %v949_v47  ;;  %1517 = vmatprep.mubr.msk.bf16.mxu0 %vm1718_vm1, %v1717_v8 }
 0x4cd   : > { %1529 = vmatprep.subr.bf16.mxu0 %v1717_v8 }
 0x4d3   : > { %1518 = vmatmul.mubr.msk.bf16.vlgmr.msra.gmra.mxu0 %vm516_vm3, %v942_v49 }
 0x4d4   : > { %1533 = vmatprep.mubr.msk.bf16.mxu0 %vm1718_vm1, %v1717_v8 }
 0x556   : > { %v619_v50 = vpop.f32.mrf.mxu0 }
 0x557   : > { %v625_v51 = vpack.c.bf16 %v619_v50, %v619_v50 }
 0x558   : > { %v1483_v52 = vpop.f32.mrf.mxu0 }
 0x559   : > { %627 = vst.msk [vmem:[#allocation3] sm:$0xf] %vm626_vm6, %v625_v51 }
 0x55a   : > { %v622_v53 = vpop.f32.mrf.mxu0 }
 0x55c   : > { %v1484_v54 = vpop.f32.mrf.mxu0 }
 0x560   : > { %v737_v55 = vpop.f32.mrf.mxu0 }
 0x561   : > { %v1428_v56 = vpack.c.bf16 %v737_v55, %v737_v55 }
 0x562   : > { %v1495_v57 = vpop.f32.mrf.mxu0 }
 0x563   : > { %747 = vrot.lane.b32.xlu0 %v1428_v56, %s1730_s26  ;;  %s1383_s26 = sshll.u32 %s402_s20, 3 }
 0x564   : > { %v740_v58 = vpop.f32.mrf.mxu0  ;;  %s404_s16 = scalar_lea.vmem [#allocation4], %s1383_s26 }
 0x566   : > { %v1496_v59 = vpop.f32.mrf.mxu0 }
 0x58b   : > { %v861_v61 = vpop.f32.mrf.mxu0 }
 0x58c   : > { %v1429_v63 = vpack.c.bf16 %v861_v61, %v861_v61 }
 0x58d   : > { %v1507_v1 = vpop.f32.mrf.mxu0 }
 0x58e   : > { %871 = vrot.lane.b32.xlu1 %v1429_v63, %s1731_s17  ;;  %s1320_s17 = sshll.u32 %s404_s16, 4  ;;  %s2033_s17 = int_to_ptr.vmem [resolvable:$true] %s1320_s17 }
 0x58f   : > { %v864_v2 = vpop.f32.mrf.mxu0  ;;  %s1655_s26 = scalar_lea.vmem %s2033_s17, 128  ;;  %p1662_p0 = scmp.lt.s32.totalorder %s2033_s17, %s1660_s29 }
 0x590   : > { %p1656_p11 = scmp.ne.s32.totalorder %s2033_s17, %s1655_s26  ;;  %p1663_p1 = scmp.lt.s32.totalorder %s1661_s15, %s1655_s26 }
 0x591   : > { %v1508_v3 = vpop.f32.mrf.mxu0 }
 0x592   : > { %p1657_p12 = pnand %p1656_p11, %p1838_p5  ;;  %p1664_p2 = por %p1663_p1, %p1662_p0 }
 0x593   : > { %v985_v4 = vpop.f32.mrf.mxu0 }
 0x594   : > { %v1430_v5 = vpack.c.bf16 %v985_v4, %v985_v4  ;;  %p1658_p13 = pneg %p1657_p12 }
 0x595   : > { %v1519_v6 = vpop.f32.mrf.mxu0 }
 0x596   : > { %995 = vrot.lane.b32.xlu0 %v1430_v5, %s1732_s18  ;;  %p1665_p3 = pnand %p1664_p2, %p1658_p13 }
 0x597   : > { %v988_v7 = vpop.f32.mrf.mxu0 }
 0x599   : > { %v1520_v9 = vpop.f32.mrf.mxu0 }
 0x59a   : > { %v1733_v9 = vmov -1.0  }
 0x5d5   : > { %v748_v10 = vpop.permute.xlu0 %747 }
 0x5d6   : > { %751 = vst.msk [vmem:[#allocation3] sm:$0xf] %vm750_vm7, %v748_v10 }
 0x600   : > { %v872_v11 = vpop.permute.xlu1 %871 }
 0x601   : > { %875 = vst.msk [vmem:[#allocation3] sm:$0xf] %vm874_vm8, %v872_v11 }
 0x608   : > { %v996_v12 = vpop.permute.xlu0 %995 }
 0x609   : > { %999 = vst.msk [vmem:[#allocation3] sm:$0xf] %vm998_vm9, %v996_v12 }
 0x610   : > { %v1000_v13 = vld [vmem:[#allocation3] sm:$0xf] }
 0x611   : > { %1526 = vmatmul.mubr.msk.bf16.vlgmr.msra.gmra.mxu1 %vm413_vm0, %v1000_v13 }
 0x612   : > { %1553 = vmatprep.mubr.msk.bf16.mxu1 %vm1718_vm1, %v1717_v8  ;;  %1538 = vmatpush3.bf16.msra.mxu1 %v1623_v38 }
 0x613   : > { %1539 = vmatprep.subr.bf16.mxu1 %v1717_v8 }
 0x616   : > { %1540 = vmatpush3.bf16.msra.mxu1 %v1624_v39 }
 0x617   : > { %1541 = vmatprep.subr.bf16.mxu1 %v1717_v8 }
 0x61a   : > { %1542 = vmatpush3.bf16.msra.mxu1 %v1625_v40 }
 0x61b   : > { %1543 = vmatprep.subr.bf16.mxu1 %v1717_v8 }
 0x61e   : > { %1544 = vmatpush3.bf16.msra.mxu1 %v1626_v41 }
 0x61f   : > { %1545 = vmatprep.subr.bf16.mxu1 %v1717_v8 }
 0x622   : > { %1546 = vmatpush3.bf16.msra.mxu1 %v1627_v42 }
 0x623   : > { %1547 = vmatprep.subr.bf16.mxu1 %v1717_v8 }
 0x626   : > { %1548 = vmatpush3.bf16.msra.mxu1 %v1628_v43 }
 0x627   : > { %1549 = vmatprep.subr.bf16.mxu1 %v1717_v8 }
 0x62a   : > { %1550 = vmatpush3.bf16.msra.mxu1 %v1629_v44 }
 0x62b   : > { %1551 = vmatprep.subr.bf16.mxu1 %v1717_v8 }
 0x62e   : > { %1552 = vmatpush3.bf16.msra.mxu1 %v1630_v45 }
 0x6d1   : > { %v1054_v14 = vpop.f32.mrf.mxu1 }
 0x6d2   : > { %v1060_v16 = vadd.f32 %v1054_v14, %v1853_v0  ;;  %v1621_v0 = vld [vmem:[%s2081_s8 + $0x8] sm:$0xff]  }
 0x6d3   : > { %v1527_v17 = vpop.f32.mrf.mxu1  ;;  %1530 = vmatpush3.bf16.msra.mxu0 %v1621_v0 }
 0x6d4   : > { %v1968_v18 = vadd.f32 %v1408_v15, %v1060_v16  ;;  %1531 = vmatprep.subr.bf16.mxu0 %v1717_v8  ;;  %v1423_v17 = vld [vmem:[%s2084_s11] ss:$0 sm:$0xff] }
 0x6d5   : > { %v1057_v19 = vpop.f32.mrf.mxu1 }
 0x6d6   : > { %v1071_v20 = vsel %vm413_vm0, %v1968_v18, 0.0 }
 0x6d7   : > { %1072 = vadd.xlane.f32.xlu1 %v1071_v20  ;;  %v1528_v21 = vpop.f32.mrf.mxu1  ;;  %1532 = vmatpush3.bf16.msra.mxu0 %v1622_v30 }
 0x760   : > { %v1073_v22 = vpop.xlane.xlu1 %1072 }
 0x761   : > { %v1074_v23 = vmul.f32 0.03125, %v1073_v22 }
 0x763   : > { %v1075_v24 = vsub.f32 %v1968_v18, %v1074_v23 }
 0x765   : > { %v1076_v26 = vmul.f32 %v1075_v24, %v1075_v24 }
 0x767   : > { %v1077_v27 = vsel %vm413_vm0, %v1076_v26, 0.0 }
 0x768   : > { %1078 = vadd.xlane.f32.xlu0 %v1077_v27 }
 0x7f1   : > { %v1079_v31 = vpop.xlane.xlu0 %1078 }
 0x7f2   : > { %v1080_v32 = vmul.f32 0.03125, %v1079_v31 }
 0x7f4   : > { %v1081_v25 = vadd.f32 1e-05, %v1080_v32 }
 0x7f6   : > { %1649 = vrsqrt.f32 %v1081_v25 }
 0x803   : > { %v1650_v33 = vpop.eup %1649 }
 0x804   : > { %v1083_v28 = vmul.f32 %v1650_v33, %v1075_v24 }
 0x806   : > { %v1090_v29 = vmul.f32 %v1409_v34, %v1083_v28 }
 0x808   : > { %v1097_v36 = vadd.f32 %v1410_v35, %v1090_v29 }
 0x80a   : > { %v1098_v37 = vpack.c.bf16 %v1097_v36, %v1097_v36 }
 0x80c   : > { %1534 = vmatmul.mubr.msk.bf16.vlgmr.msra.gmra.mxu0 %vm413_vm0, %v1098_v37 }
 0x8cc   : > { %v1159_v47 = vpop.f32.mrf.mxu0 }
 0x8cd   : > { %v1160_v48 = vadd.f32 %v1411_v46, %v1159_v47 }
 0x8ce   : > { %v1535_v49 = vpop.f32.mrf.mxu0 }
 0x8cf   : > { %v1166_v50 = vmul.f32 0.70710677, %v1160_v48  ;;  %v1165_v12 = vmul.f32 0.5, %v1160_v48 }
 0x8d0   : > { %v1162_v51 = vpop.f32.mrf.mxu0 }
 0x8d1   : > { %v1169_v52 = vand.u32 2147483647, %v1166_v50  ;;  %vm1167_vm10 = vcmp.ge.f32.partialorder %v1166_v50, 0.0 }
 0x8d2   : > { %v1536_v53 = vpop.f32.mrf.mxu0  ;;  %v1168_v10 = vsel %vm1167_vm10, 1.0, %v1733_v9 }
 0x8d3   : > { %v1170_v54 = vmul.f32 0.3275911, %v1169_v52  ;;  %v1182_v8 = vsub.f32 0.0, %v1169_v52 }
 0x8d5   : > { %v1171_v55 = vadd.f32 1.0, %v1170_v54  ;;  %v1183_v56 = vmul.f32 %v1182_v8, %v1169_v52 }
 0x8d7   : > { %1651 = vrcp.f32 %v1171_v55  ;;  %v1184_v59 = vmul.f32 1.442695, %v1183_v56 }
 0x8d9   : > { %1653 = vpow2.f32 %v1184_v59 }
 0x8e4   : > { %v1652_v57 = vpop.eup %1651 }
 0x8e5   : > { %v1173_v58 = vmul.f32 1.0614054, %v1652_v57 }
 0x8e6   : > { %v1654_v5 = vpop.eup %1653 }
 0x8e7   : > { %v1174_v60 = vadd.f32 -1.4531521, %v1173_v58 }
 0x8e9   : > { %v1175_v61 = vmul.f32 %v1652_v57, %v1174_v60 }
 0x8eb   : > { %v1176_v62 = vadd.f32 1.4214138, %v1175_v61 }
 0x8ed   : > { %v1177_v63 = vmul.f32 %v1652_v57, %v1176_v62 }
 0x8ef   : > { %v1178_v1 = vadd.f32 -0.28449672, %v1177_v63 }
 0x8f1   : > { %v1179_v2 = vmul.f32 %v1652_v57, %v1178_v1 }
 0x8f3   : > { %v1180_v3 = vadd.f32 0.2548296, %v1179_v2 }
 0x8f5   : > { %v1181_v4 = vmul.f32 %v1652_v57, %v1180_v3 }
 0x8f7   : > { %v1186_v6 = vmul.f32 %v1654_v5, %v1181_v4 }
 0x8f9   : > { %v1187_v7 = vsub.f32 1.0, %v1186_v6 }
 0x8fb   : > { %v1188_v11 = vmul.f32 %v1187_v7, %v1168_v10 }
 0x8fd   : > { %v1189_v13 = vadd.f32 1.0, %v1188_v11 }
 0x8ff   : > { %v1190_v14 = vmul.f32 %v1189_v13, %v1165_v12 }
 0x901   : > { %v1191_v15 = vpack.c.bf16 %v1190_v14, %v1190_v14 }
 0x903   : > { %1554 = vmatmul.mubr.bf16.vlgmr.msra.gmra.mxu1 %v1191_v15 }
 0x9c3   : > { %v1290_v16 = vpop.f32.mrf.mxu1 }
 0x9c4   : > { %v1296_v19 = vadd.f32 %v1290_v16, %v1968_v18 }
 0x9c5   : > { %v1555_v20 = vpop.f32.mrf.mxu1 }
 0x9c6   : > { %v1304_v21 = vadd.f32 %v1423_v17, %v1296_v19 }
 0x9c7   : > { %v1293_v22 = vpop.f32.mrf.mxu1 }
 0x9c8   : > { %1305 = vst.msk [vmem:[%s404_s16] sm:$0xff] %vm413_vm0, %v1304_v21 }
 0x9c9   : > { %v1556_v23 = vpop.f32.mrf.mxu1 }
 0x9ca   : > { %1668 = shalt.err (!%p1665_p3)
}
 0x9cb   : > { %s1669_s16 = scalar_lea.hbm %s2031_s0, 128  ;;  %s1673_s19 = scalar_lea.hbm %s2085_s12, 256 }
 0x9cc   : > { %p1670_p4 = scmp.ne.s32.totalorder %s2031_s0, %s1669_s16  ;;  %p1674_p9 = scmp.lt.s32.totalorder %s2031_s0, %s2085_s12 }
 0x9cd   : > { %p1675_p10 = scmp.lt.s32.totalorder %s1673_s19, %s1669_s16 }
 0x9ce   : > { %p1671_p7 = pnand %p1670_p4, %p1838_p5 }
 0x9cf   : > { %p1676_p11 = por %p1675_p10, %p1674_p9 }
 0x9d0   : > { %p1672_p8 = pneg %p1671_p7 }
 0x9d2   : > { %p1677_p12 = pnand %p1676_p11, %p1672_p8 }
 0x9d4   : > { %1680 = shalt.err (!%p1677_p12)
}
 0x9d5   : > { %1557 = dma.vmem_to_hbm [thread:$0]  (%p1838_p5), %s2033_s17, 128, %s2031_s0, %s1307_s25  }
 0x9d6 PF: > { %p1563_p13 = scmp.ge.s32.totalorder %s1715_s24, 2  ;;  %s1332_s26 = sand.u32 1, %s1703_s21  }
 0x9d7   : > { %s1333_s1 = scalar_lea.sflag [#allocation5], %s1332_s26 }
 0x9d8   : > { %p1560_p0 = pnand %p1563_p13, %p1842_p6 }
 0x9da   : > { %p1561_p1 = pneg %p1560_p0 }
 0x9dc   : > { %1698 = dma.done.wait (%p1561_p1), %s1333_s1, 128  }
 0x9dd   : > { %1700 = vsyncadd (%p1561_p1), %s1333_s1, 4294967168  ;;  %p22_p2 = scmp.ge.s32.totalorder %s1825_s27, 4   ;;  %s2092_s21 = smov %s1707_s22 }
 0x9de   : > { %s2093_s22 = smov %s1711_s23  ;;  %s2094_s23 = smov %s1836_s30 }
 0x9df   : > { %s2095_s24 = smov %s1825_s27  ;;  %24 = sbr.rel (!%p22_p2) target bundleno = 6 (0x6), region = 103 }
 0x9e4   :  { %1338 = vsyncpa [#allocation5], 1 }
 0x9e5   :  { %1340 = vsyncpa [#allocation5 + $0x1], 1 }

</bundles_post_ra>
